<compile_context>
chip_gen: v6e
topology: v6e:2x2x1
jax: 0.10.0
libtpu: 0.0.40
codegen_flags: <defaults>
</compile_context>

<pallas_src>
import numpy as np
import jax
import jax.numpy as jnp
from jax.experimental import pallas as pl
from jax.experimental.pallas import tpu as pltpu


# Stage-1 Kronecker matrix budget: use the lane-dense Kronecker path whenever
# the (H*W, Ho1*Wo1) f32 matrix fits in this many bytes (frames up to ~64x64).
_KRON_BYTES_MAX = 4 * 1024 * 1024


# --------------------------- pooling matrices --------------------------------
def _avg_matrix(n_in: int, k: int) -> np.ndarray:
    """(n_out, n_in) matrix M with M[i, h] = 1/count_i for h inside window i.

    Implements 1-D AvgPool(k, k, ceil_mode=True, count_include_pad=False) as a
    matmul: the last (partial) window simply has fewer, larger weights.
    """
    n_out = -(-n_in // k)
    m = np.zeros((n_out, n_in), np.float32)
    for i in range(n_out):
        lo, hi = i * k, min((i + 1) * k, n_in)
        m[i, lo:hi] = 1.0 / (hi - lo)
    return m


def _kron_pool_matrix(hi: int, wi: int, k: int) -> np.ndarray:
    """(Hi*Wi, Ho*Wo) matrix: flattened 2-D AvgPool(k) = Ah^T (x) Aw^T."""
    return np.kron(_avg_matrix(hi, k).T, _avg_matrix(wi, k).T).astype(np.float32)


def _mat_dtype(in_dtype):
    # bf16/f16 inputs: build matrices in the input dtype so the MXU runs
    # natively and the block is never up-cast (weights are exact or within
    # output-dtype rounding).  Everything else stays f32.
    dt = jnp.dtype(in_dtype)
    if dt in (jnp.dtype(jnp.bfloat16), jnp.dtype(jnp.float16)):
        return in_dtype
    return jnp.float32


# ----------------------------- sizing helpers ---------------------------------
def _pad8(v):
    return -(-v // 8) * 8


def _pad128(v):
    return -(-v // 128) * 128


def _tile_bytes(r, c, itemsize):
    """Approx VMEM footprint of an (r, c) buffer with (8,128) tiling."""
    return _pad8(r) * _pad128(c) * itemsize


def _vmem_budget_and_limit():
    """Generation-aware (budget_for_live_blocks, vmem_limit_bytes)."""
    cap = None
    try:
        info = pltpu.get_tpu_info()
        cap = int(getattr(info, "vmem_capacity_bytes", 0)) or None
    except Exception:
        cap = None
    if cap is None:
        cap = 64 * 1024 * 1024          # conservative: v7x per-TensorCore VMEM
    budget = min(int(cap * 0.30), 40 * 1024 * 1024)   # leaves headroom for
    limit = min(int(cap * 0.75), 96 * 1024 * 1024)    # Mosaic temporaries
    return budget, limit


# ------------------------- Kronecker (small-frame) path -----------------------
def _kron_pool_kernel(x_ref, k1_ref, k2_ref, k3_ref, s1_ref, s2_ref, s3_ref):
    # Each stage is one flattened, lane-dense 2-D MXU matmul (M = tn rows).
    # The native-dtype block feeds the matmul directly; accumulation is f32.
    s1 = jnp.dot(x_ref[...], k1_ref[...], preferred_element_type=jnp.float32)
    s1_ref[...] = s1.astype(s1_ref.dtype)
    # Round through the output dtype between stages to match PyTorch, which
    # materializes s1/s2 in the module dtype before pooling again (no-op for f32).
    s2 = jnp.dot(s1_ref[...], k2_ref[...], preferred_element_type=jnp.float32)
    s2_ref[...] = s2.astype(s2_ref.dtype)
    s3 = jnp.dot(s2_ref[...], k3_ref[...], preferred_element_type=jnp.float32)
    s3_ref[...] = s3.astype(s3_ref.dtype)


def _forward_kron(s0, lead, H, W, sizes, mat_dt, budget, vmem_limit, max_tn):
    (Ho1, Wo1), (Ho2, Wo2), (Ho3, Wo3) = sizes
    O1, O2, O3 = Ho1 * Wo1, Ho2 * Wo2, Ho3 * Wo3
    HW = H * W
    N = int(np.prod(lead))
    x2 = s0.reshape((N, HW))                       # free reshape (contiguous)

    k1 = jnp.asarray(_kron_pool_matrix(H, W, 4), dtype=mat_dt)
    k2 = jnp.asarray(_kron_pool_matrix(Ho1, Wo1, 2), dtype=mat_dt)
    k3 = jnp.asarray(_kron_pool_matrix(Ho2, Wo2, 2), dtype=mat_dt)

    in_item = jnp.dtype(s0.dtype).itemsize
    mat_item = jnp.dtype(mat_dt).itemsize

    # Per-plane live bytes: double-buffered input row + per-stage f32 value +
    # double-buffered output rows.  25% headroom for Mosaic temporaries.
    per_plane = 2 * _pad128(HW) * in_item
    for o in (O1, O2, O3):
        per_plane += _pad128(o) * 4 + 2 * _pad128(o) * in_item
    per_plane = int(per_plane * 1.25)
    resident = 2 * (_tile_bytes(HW, O1, mat_item)
                    + _tile_bytes(O1, O2, mat_item)
                    + _tile_bytes(O2, O3, mat_item))

    tn = max(1, (budget - resident) // per_plane)
    if max_tn is not None:
        tn = min(tn, int(max_tn))
    if N >= 32:
        # Keep >= 4 grid steps so each v7x TensorCore gets >= 2 pipelined steps.
        tn = min(tn, max(8, (N // 4) // 8 * 8))
    tn = min(tn, N)
    if tn < N:
        # (8,128) rule: the second-to-last block dim must be a multiple of 8
        # (or equal the full dim).
        tn = max(8, tn // 8 * 8)
        tn = min(tn, N)
    grid = (pl.cdiv(N, tn),)

    flops = 2 * N * (HW * O1 + O1 * O2 + O2 * O3)
    bytes_acc = (N * HW * in_item + N * (O1 + O2 + O3) * in_item
                 + (HW * O1 + O1 * O2 + O2 * O3) * mat_item)
    cost = pl.CostEstimate(flops=flops, transcendentals=0,
                           bytes_accessed=bytes_acc)

    def mat_spec(a):
        # Constant block index -> matrix DMA'd once and stays resident in VMEM.
        return pl.BlockSpec(a.shape, lambda i: (0, 0))

    s1, s2, s3 = pl.pallas_call(
        _kron_pool_kernel,
        out_shape=(
            jax.ShapeDtypeStruct((N, O1), s0.dtype),
            jax.ShapeDtypeStruct((N, O2), s0.dtype),
            jax.ShapeDtypeStruct((N, O3), s0.dtype),
        ),
        grid=grid,
        in_specs=[
            pl.BlockSpec((tn, HW), lambda i: (i, 0)),
            mat_spec(k1), mat_spec(k2), mat_spec(k3),
        ],
        out_specs=(
            pl.BlockSpec((tn, O1), lambda i: (i, 0)),
            pl.BlockSpec((tn, O2), lambda i: (i, 0)),
            pl.BlockSpec((tn, O3), lambda i: (i, 0)),
        ),
        compiler_params=pltpu.CompilerParams(
            dimension_semantics=("parallel",),
            vmem_limit_bytes=vmem_limit,
        ),
        cost_estimate=cost,
    )(x2, k1, k2, k3)

    return (s1.reshape(lead + (Ho1, Wo1)),
            s2.reshape(lead + (Ho2, Wo2)),
            s3.reshape(lead + (Ho3, Wo3)))


# ------------------------ separable (large-frame) path ------------------------
def _sep_pool_kernel(x_ref, aw1_ref, ah1t_ref, aw2_ref, ah2t_ref,
                     aw3_ref, ah3t_ref, s1_ref, s2_ref, s3_ref):
    def stage(y, aw_ref, aht_ref):
        n, hi, wi = y.shape
        wo = aw_ref.shape[1]
        ho = aht_ref.shape[1]
        # W (lane) reduction FIRST: one flattened 2-D MXU matmul, M = n*hi.
        t = jnp.dot(y.reshape(n * hi, wi), aw_ref[...],
                    preferred_element_type=jnp.float32).reshape(n, hi, wo)
        # H reduction on the k-x narrower result: minor-dim transpose (XLU),
        # then a second flattened 2-D matmul, M = n*wo.
        t = pltpu.einshape("nhw->nwh", t).reshape(n * wo, hi)
        s = jnp.dot(t, aht_ref[...], preferred_element_type=jnp.float32)
        return pltpu.einshape("nwh->nhw", s.reshape(n, wo, ho))

    s1 = stage(x_ref[...], aw1_ref, ah1t_ref)
    s1_ref[...] = s1.astype(s1_ref.dtype)
    # Round through the output dtype between stages to match PyTorch (no-op for f32).
    s2 = stage(s1_ref[...], aw2_ref, ah2t_ref)
    s2_ref[...] = s2.astype(s2_ref.dtype)
    s3 = stage(s2_ref[...], aw3_ref, ah3t_ref)
    s3_ref[...] = s3.astype(s3_ref.dtype)


def _forward_separable(s0, lead, H, W, sizes, mat_dt, budget, vmem_limit, max_tn):
    # TODO(synk): this large-frame path is not exercised by the in-script test
    # (test shapes use the Kronecker path); validate on target frame sizes.
    (Ho1, Wo1), (Ho2, Wo2), (Ho3, Wo3) = sizes
    N = int(np.prod(lead))
    x3 = s0.reshape((N, H, W))                     # free reshape (contiguous)

    aw1 = jnp.asarray(_avg_matrix(W, 4).T.copy(), dtype=mat_dt)
    ah1t = jnp.asarray(_avg_matrix(H, 4).T.copy(), dtype=mat_dt)
    aw2 = jnp.asarray(_avg_matrix(Wo1, 2).T.copy(), dtype=mat_dt)
    ah2t = jnp.asarray(_avg_matrix(Ho1, 2).T.copy(), dtype=mat_dt)
    aw3 = jnp.asarray(_avg_matrix(Wo2, 2).T.copy(), dtype=mat_dt)
    ah3t = jnp.asarray(_avg_matrix(Ho2, 2).T.copy(), dtype=mat_dt)
    mats = (aw1, ah1t, aw2, ah2t, aw3, ah3t)

    in_item = jnp.dtype(s0.dtype).itemsize
    mat_item = jnp.dtype(mat_dt).itemsize

    per_plane = 2 * _tile_bytes(H, W, in_item)            # double-buffered input
    hi, wi = H, W
    for ho, wo in sizes:
        per_plane += _tile_bytes(hi, wo, 4)               # W-reduced stage value
        per_plane += _tile_bytes(wo, hi, 4)               # minor transpose copy
        per_plane += _tile_bytes(wo, ho, 4) + _tile_bytes(ho, wo, 4)
        per_plane += 2 * _tile_bytes(ho, wo, in_item)     # double-buffered output
        hi, wi = ho, wo
    per_plane = int(per_plane * 1.3)                      # Mosaic temp headroom
    resident = 2 * sum(_tile_bytes(m.shape[0], m.shape[1], mat_item) for m in mats)

    tn = max(1, (budget - resident) // per_plane)
    if max_tn is not None:
        tn = min(tn, int(max_tn))
    if N >= 8:
        tn = min(tn, max(1, N // 4))    # >= 4 grid steps (2 per v7x TensorCore)
    elif N > 1:
        tn = min(tn, -(-N // 2))
    tn = min(tn, N)
    grid = (pl.cdiv(N, tn),)
    # TODO(synk): frames whose single plane exceeds the VMEM budget would need
    # an additional H-tiling level (windows align on multiples of 16).

    flops, bytes_acc = 0, N * H * W * in_item
    hi, wi = H, W
    for ho, wo in sizes:
        flops += 2 * N * (hi * wi * wo + wo * hi * ho)
        bytes_acc += N * ho * wo * in_item
        hi, wi = ho, wo
    bytes_acc += sum(int(m.size) for m in mats) * mat_item
    cost = pl.CostEstimate(flops=flops, transcendentals=0,
                           bytes_accessed=bytes_acc)

    def mat_spec(a):
        return pl.BlockSpec(a.shape, lambda i: (0, 0))

    s1, s2, s3 = pl.pallas_call(
        _sep_pool_kernel,
        out_shape=(
            jax.ShapeDtypeStruct((N, Ho1, Wo1), s0.dtype),
            jax.ShapeDtypeStruct((N, Ho2, Wo2), s0.dtype),
            jax.ShapeDtypeStruct((N, Ho3, Wo3), s0.dtype),
        ),
        grid=grid,
        in_specs=[
            pl.BlockSpec((tn, H, W), lambda i: (i, 0, 0)),
            mat_spec(aw1), mat_spec(ah1t),
            mat_spec(aw2), mat_spec(ah2t),
            mat_spec(aw3), mat_spec(ah3t),
        ],
        out_specs=(
            pl.BlockSpec((tn, Ho1, Wo1), lambda i: (i, 0, 0)),
            pl.BlockSpec((tn, Ho2, Wo2), lambda i: (i, 0, 0)),
            pl.BlockSpec((tn, Ho3, Wo3), lambda i: (i, 0, 0)),
        ),
        compiler_params=pltpu.CompilerParams(
            dimension_semantics=("parallel",),
            vmem_limit_bytes=vmem_limit,
        ),
        cost_estimate=cost,
    )(x3, *mats)

    return (s1.reshape(lead + (Ho1, Wo1)),
            s2.reshape(lead + (Ho2, Wo2)),
            s3.reshape(lead + (Ho3, Wo3)))


# ------------------------------- wrapper --------------------------------------
def avg_pool_forward(s0, *, max_tn=None):
    """Equivalent of AvgPool.forward (4-D (B,C,H,W) or 5-D (B,T,C,H,W) input)."""
    if s0.ndim == 5:
        lead = s0.shape[:3]    # (B, T, C)
    elif s0.ndim == 4:
        lead = s0.shape[:2]    # (B, C)
    else:
        raise ValueError("expected 4-D (B,C,H,W) or 5-D (B,T,C,H,W) input")
    H, W = s0.shape[-2:]

    Ho1, Wo1 = -(-H // 4), -(-W // 4)
    Ho2, Wo2 = -(-Ho1 // 2), -(-Wo1 // 2)
    Ho3, Wo3 = -(-Ho2 // 2), -(-Wo2 // 2)
    sizes = ((Ho1, Wo1), (Ho2, Wo2), (Ho3, Wo3))

    mat_dt = _mat_dtype(s0.dtype)
    budget, vmem_limit = _vmem_budget_and_limit()

    # Lane-dense Kronecker path for small frames (narrow W / small H*W), where
    # per-row DMAs of a (N, H, W) layout would be far below efficient DMA
    # granularity; separable flattened-matmul path otherwise.
    k1_bytes = H * W * Ho1 * Wo1 * 4
    if k1_bytes <= _KRON_BYTES_MAX:
        return _forward_kron(s0, lead, H, W, sizes, mat_dt,
                             budget, vmem_limit, max_tn)
    return _forward_separable(s0, lead, H, W, sizes, mat_dt,
                              budget, vmem_limit, max_tn)


# ----------------------------- reference (numpy) ------------------------------
def _ref_pool_np(x, k):
    N, H, W = x.shape
    Ho, Wo = -(-H // k), -(-W // k)
    out = np.zeros((N, Ho, Wo), np.float32)
    for i in range(Ho):
        for j in range(Wo):
            h0, h1 = i * k, min(i * k + k, H)
            w0, w1 = j * k, min(j * k + k, W)
            out[:, i, j] = x[:, h0:h1, w0:w1].mean(axis=(1, 2))
    return out


def _check(x, *, max_tn=None):
    outs = avg_pool_forward(x, max_tn=max_tn)
    jax.block_until_ready(outs)
    s1, s2, s3 = outs
    H, W = x.shape[-2:]
    xn = np.asarray(x, np.float32).reshape(-1, H, W)
    r1 = _ref_pool_np(xn, 4)
    r2 = _ref_pool_np(r1, 2)
    r3 = _ref_pool_np(r2, 2)
    np.testing.assert_allclose(np.asarray(s1).reshape(r1.shape), r1, rtol=1e-5, atol=1e-5)
    np.testing.assert_allclose(np.asarray(s2).reshape(r2.shape), r2, rtol=1e-5, atol=1e-5)
    np.testing.assert_allclose(np.asarray(s3).reshape(r3.shape), r3, rtol=1e-5, atol=1e-5)
    return s1, s2, s3


if __name__ == "__main__":
    key = jax.random.PRNGKey(0)
    k4, k5 = jax.random.split(key)

    # 4-D single-frame input; H = W = 18 exercises ceil_mode partial windows at
    # every stage: 18 -> 5 -> 3 -> 2.
    B, C, H, W = 2, 4, 18, 18
    x4 = jax.random.normal(k4, (B, C, H, W), dtype=jnp.float32)
    s1, s2, s3 = _check(x4)
    assert s1.shape == (B, C, 5, 5)
    assert s2.shape == (B, C, 3, 3)
    assert s3.shape == (B, C, 2, 2)

    # 5-D time-series input; N = B*T*C = 9 with max_tn=8 forces a ragged last
    # N-block (keeps the Pallas block-clamp path exercised, per the review).
    Bt, T, Ct = 1, 3, 3
    x5 = jax.random.normal(k5, (Bt, T, Ct, H, W), dtype=jnp.float32)
    t1, t2, t3 = _check(x5, max_tn=8)
    assert t1.shape == (Bt, T, Ct, 5, 5)
    assert t2.shape == (Bt, T, Ct, 3, 3)
    assert t3.shape == (Bt, T, Ct, 2, 2)

    print("KERNEL_OK")
</pallas_src>

<mosaic_0001>
module attributes {stable_mosaic.version = 11 : i64} {
  func.func @_kron_pool_kernel(%arg0: i32, %arg1: memref<8x324xf32, #tpu.memory_space<vmem>>, %arg2: memref<324x25xf32, #tpu.memory_space<vmem>>, %arg3: memref<25x9xf32, #tpu.memory_space<vmem>>, %arg4: memref<9x4xf32, #tpu.memory_space<vmem>>, %arg5: memref<8x25xf32, #tpu.memory_space<vmem>>, %arg6: memref<8x9xf32, #tpu.memory_space<vmem>>, %arg7: memref<8x4xf32, #tpu.memory_space<vmem>>) attributes {dimension_semantics = [#tpu.dimension_semantics<parallel>], iteration_bounds = array<i64: 1>, scalar_prefetch = 0 : i64, scratch_operands = 0 : i64, tpu.core_type = #tpu.core_type<tc>, window_params = [{transform_indices = @transform_0, window_bounds = array<i64: 8, 324>}, {pipeline_mode = #tpu.pipeline_mode<synchronous>, transform_indices = @transform_1, window_bounds = array<i64: 324, 25>}, {pipeline_mode = #tpu.pipeline_mode<synchronous>, transform_indices = @transform_2, window_bounds = array<i64: 25, 9>}, {pipeline_mode = #tpu.pipeline_mode<synchronous>, transform_indices = @transform_3, window_bounds = array<i64: 9, 4>}, {transform_indices = @transform_4, window_bounds = array<i64: 8, 25>}, {transform_indices = @transform_5, window_bounds = array<i64: 8, 9>}, {transform_indices = @transform_6, window_bounds = array<i64: 8, 4>}]} {
    %c0 = arith.constant 0 : index
    %c0_0 = arith.constant 0 : index
    %0 = vector.load %arg1[%c0, %c0_0] : memref<8x324xf32, #tpu.memory_space<vmem>>, vector<8x324xf32>
    %c0_1 = arith.constant 0 : index
    %c0_2 = arith.constant 0 : index
    %1 = vector.load %arg2[%c0_1, %c0_2] : memref<324x25xf32, #tpu.memory_space<vmem>>, vector<324x25xf32>
    %cst = arith.constant dense<0.000000e+00> : vector<8x25xf32>
    %2 = tpu.matmul %0, %1, %cst {dimension_numbers = #tpu.dot_dimension_numbers<[1], [0], [0], [1], [0, 0, 1, 1], [], []>} : vector<8x324xf32>, vector<324x25xf32>, vector<8x25xf32> -> vector<8x25xf32>
    %c0_3 = arith.constant 0 : index
    %c0_4 = arith.constant 0 : index
    %3 = vector.load %arg5[%c0_3, %c0_4] : memref<8x25xf32, #tpu.memory_space<vmem>>, vector<8x25xf32>
    tpu.vector_store %arg5[%c0_3, %c0_4], %2 {strides = array<i32>} : memref<8x25xf32, #tpu.memory_space<vmem>>, vector<8x25xf32>,
    %c0_5 = arith.constant 0 : index
    %c0_6 = arith.constant 0 : index
    %4 = vector.load %arg5[%c0_5, %c0_6] : memref<8x25xf32, #tpu.memory_space<vmem>>, vector<8x25xf32>
    %c0_7 = arith.constant 0 : index
    %c0_8 = arith.constant 0 : index
    %5 = vector.load %arg3[%c0_7, %c0_8] : memref<25x9xf32, #tpu.memory_space<vmem>>, vector<25x9xf32>
    %cst_9 = arith.constant dense<0.000000e+00> : vector<8x9xf32>
    %6 = tpu.matmul %4, %5, %cst_9 {dimension_numbers = #tpu.dot_dimension_numbers<[1], [0], [0], [1], [0, 0, 1, 1], [], []>} : vector<8x25xf32>, vector<25x9xf32>, vector<8x9xf32> -> vector<8x9xf32>
    %c0_10 = arith.constant 0 : index
    %c0_11 = arith.constant 0 : index
    %7 = vector.load %arg6[%c0_10, %c0_11] : memref<8x9xf32, #tpu.memory_space<vmem>>, vector<8x9xf32>
    tpu.vector_store %arg6[%c0_10, %c0_11], %6 {strides = array<i32>} : memref<8x9xf32, #tpu.memory_space<vmem>>, vector<8x9xf32>,
    %c0_12 = arith.constant 0 : index
    %c0_13 = arith.constant 0 : index
    %8 = vector.load %arg6[%c0_12, %c0_13] : memref<8x9xf32, #tpu.memory_space<vmem>>, vector<8x9xf32>
    %c0_14 = arith.constant 0 : index
    %c0_15 = arith.constant 0 : index
    %9 = vector.load %arg4[%c0_14, %c0_15] : memref<9x4xf32, #tpu.memory_space<vmem>>, vector<9x4xf32>
    %cst_16 = arith.constant dense<0.000000e+00> : vector<8x4xf32>
    %10 = tpu.matmul %8, %9, %cst_16 {dimension_numbers = #tpu.dot_dimension_numbers<[1], [0], [0], [1], [0, 0, 1, 1], [], []>} : vector<8x9xf32>, vector<9x4xf32>, vector<8x4xf32> -> vector<8x4xf32>
    %c0_17 = arith.constant 0 : index
    %c0_18 = arith.constant 0 : index
    %11 = vector.load %arg7[%c0_17, %c0_18] : memref<8x4xf32, #tpu.memory_space<vmem>>, vector<8x4xf32>
    tpu.vector_store %arg7[%c0_17, %c0_18], %10 {strides = array<i32>} : memref<8x4xf32, #tpu.memory_space<vmem>>, vector<8x4xf32>,
    return
  }
  func.func @transform_0(%arg0: i32) -> (i32, i32) {
    %c0_i32 = arith.constant 0 : i32
    %c0_i32_0 = arith.constant 0 : i32
    return %arg0, %c0_i32 : i32, i32
  }
  func.func @transform_1(%arg0: i32) -> (i32, i32) {
    %c0_i32 = arith.constant 0 : i32
    %c0_i32_0 = arith.constant 0 : i32
    %c0_i32_1 = arith.constant 0 : i32
    return %c0_i32, %c0_i32_0 : i32, i32
  }
  func.func @transform_2(%arg0: i32) -> (i32, i32) {
    %c0_i32 = arith.constant 0 : i32
    %c0_i32_0 = arith.constant 0 : i32
    %c0_i32_1 = arith.constant 0 : i32
    return %c0_i32, %c0_i32_0 : i32, i32
  }
  func.func @transform_3(%arg0: i32) -> (i32, i32) {
    %c0_i32 = arith.constant 0 : i32
    %c0_i32_0 = arith.constant 0 : i32
    %c0_i32_1 = arith.constant 0 : i32
    return %c0_i32, %c0_i32_0 : i32, i32
  }
  func.func @transform_4(%arg0: i32) -> (i32, i32) {
    %c0_i32 = arith.constant 0 : i32
    %c0_i32_0 = arith.constant 0 : i32
    return %arg0, %c0_i32 : i32, i32
  }
  func.func @transform_5(%arg0: i32) -> (i32, i32) {
    %c0_i32 = arith.constant 0 : i32
    %c0_i32_0 = arith.constant 0 : i32
    return %arg0, %c0_i32 : i32, i32
  }
  func.func @transform_6(%arg0: i32) -> (i32, i32) {
    %c0_i32 = arith.constant 0 : i32
    %c0_i32_0 = arith.constant 0 : i32
    return %arg0, %c0_i32 : i32, i32
  }
}

</mosaic_0001>

<bundles_post_ra>
// kernel: tpu_custom_call.1
= control target key start
LH: loop header
LB: loop body
LE: loop exit
PB: predicated region body
PF: predicated region fallthrough
CT: control target
= control target key end

     0   :  { %12 = vsyncpa [#allocation3], 0  ;;  %v559_v4 = vmov 0.0   ;;  %vm560_vm0 = vmmov 0   ;;  %vm70_vm1 = vcmask 1043456   ;;  %s780_s0 = inlined_call_operand.vmem [shape: f32[8,324], index: 0, kind: input, shape index: {}]   ;;  %s781_s1 = inlined_call_operand.vmem [shape: f32[324,25], index: 1, kind: input, shape index: {}]   ;;  %s782_s2 = inlined_call_operand.vmem [shape: f32[25,9], index: 2, kind: input, shape index: {}]   ;;  %s783_s3 = inlined_call_operand.vmem [shape: f32[9,4], index: 3, kind: input, shape index: {}]   ;;  %s784_s4 = inlined_call_operand.hbm [shape: f32[8,25], index: 4, kind: output, shape index: {0}]   ;;  %s785_s5 = inlined_call_operand.hbm [shape: f32[8,9], index: 5, kind: output, shape index: {1}]   ;;  %s786_s6 = inlined_call_operand.vmem [shape: f32[8,4], index: 6, kind: output, shape index: {2}]  }
   0x1   :  { %v56_v0 = vld [vmem:[%s781_s1 + $0xf8] sm:$0xff]  ;;  %v55_v2 = vld [vmem:[%s781_s1 + $0xf0] sm:$0xff]  ;;  %472 = vmatprep.subr.mxu1 %v559_v4  ;;  %v54_v5 = vld [vmem:[%s781_s1 + $0xe8] sm:$0xff]  ;;  %490 = vmatprep.mubr.msk.f32.mxu1 %vm560_vm0, %v559_v4 }
   0x2   :  { %v40_v1 = vld [vmem:[%s781_s1 + $0x78] sm:$0xff]  ;;  %419 = vmatprep.subr.mxu0 %v56_v0  ;;  %v39_v3 = vld [vmem:[%s781_s1 + $0x70] sm:$0xff]  ;;  %v38_v6 = vld [vmem:[%s781_s1 + $0x68] sm:$0xff] }
   0x3   :  { %420 = vmatpush3.msra.mxu0 %v40_v1  ;;  %v53_v7 = vld [vmem:[%s781_s1 + $0xe0] sm:$0xff]  ;;  %v52_v9 = vld [vmem:[%s781_s1 + $0xd8] sm:$0xff]  ;;  %v51_v13 = vld [vmem:[%s781_s1 + $0xd0] sm:$0xff] }
   0x4   :  { %421 = vmatprep.subr.mxu0 %v55_v2  ;;  %v37_v8 = vld [vmem:[%s781_s1 + $0x60] sm:$0xff]  ;;  %v36_v11 = vld [vmem:[%s781_s1 + $0x58] sm:$0xff]  ;;  %v63_v14 = vld [vmem:[%s781_s1 + $0x130] sm:$0xff] }
   0x5   :  { %422 = vmatpush3.msra.mxu0 %v39_v3  ;;  %v65_v10 = vld [vmem:[%s781_s1 + $0x140] sm:$0xf]  ;;  %v64_v12 = vld [vmem:[%s781_s1 + $0x138] sm:$0xff]  ;;  %v35_v15 = vld [vmem:[%s781_s1 + $0x50] sm:$0xff] }
   0x6   :  { %423 = vmatprep.subr.mxu0 %v54_v5  ;;  %473 = vmatpush3.msk.msra.mxu1 %vm70_vm1, %v65_v10  ;;  %v50_v16 = vld [vmem:[%s781_s1 + $0xc8] sm:$0xff]  ;;  %v49_v19 = vld [vmem:[%s781_s1 + $0xc0] sm:$0xff]  ;;  %v48_v22 = vld [vmem:[%s781_s1 + $0xb8] sm:$0xff] }
   0x7   :  { %424 = vmatpush3.msra.mxu0 %v38_v6  ;;  %474 = vmatprep.subr.mxu1 %v559_v4  ;;  %v62_v17 = vld [vmem:[%s781_s1 + $0x128] sm:$0xff]  ;;  %v61_v20 = vld [vmem:[%s781_s1 + $0x120] sm:$0xff]  ;;  %v60_v23 = vld [vmem:[%s781_s1 + $0x118] sm:$0xff] }
   0x8   :  { %425 = vmatprep.subr.mxu0 %v53_v7  ;;  %475 = vmatpush3.msra.mxu1 %v64_v12  ;;  %v34_v18 = vld [vmem:[%s781_s1 + $0x48] sm:$0xff]  ;;  %v33_v21 = vld [vmem:[%s781_s1 + $0x40] sm:$0xff] }
   0x9   :  { %426 = vmatpush3.msra.mxu0 %v37_v8  ;;  %476 = vmatprep.subr.mxu1 %v559_v4 }
   0xa   :  { %427 = vmatprep.subr.mxu0 %v52_v9  ;;  %477 = vmatpush3.msra.mxu1 %v63_v14 }
   0xb   :  { %428 = vmatpush3.msra.mxu0 %v36_v11  ;;  %478 = vmatprep.subr.mxu1 %v559_v4 }
   0xc   :  { %429 = vmatprep.subr.mxu0 %v51_v13  ;;  %479 = vmatpush3.msra.mxu1 %v62_v17 }
   0xd   :  { %430 = vmatpush3.msra.mxu0 %v35_v15  ;;  %480 = vmatprep.subr.mxu1 %v559_v4 }
   0xe   :  { %431 = vmatprep.subr.mxu0 %v50_v16 }
   0xf   :  { %432 = vmatpush3.msra.mxu0 %v34_v18 }
  0x10   :  { %13 = vsyncpa [#allocation5], 0  ;;  %433 = vmatprep.subr.mxu0 %v49_v19  ;;  %v32_v24 = vld [vmem:[%s781_s1 + $0x38] sm:$0xff]  ;;  %481 = vmatpush3.msra.mxu1 %v61_v20  ;;  %v47_v25 = vld [vmem:[%s781_s1 + $0xb0] sm:$0xff]  ;;  %vm66_vm2 = vcmask 556032   ;;  %vm224_vm3 = vcmask 1040384  }
  0x11   :  { %434 = vmatpush3.msra.mxu0 %v33_v21  ;;  %482 = vmatprep.subr.mxu1 %v559_v4  ;;  %v59_v26 = vld [vmem:[%s781_s1 + $0x110] sm:$0xff]  ;;  %v46_v28 = vld [vmem:[%s781_s1 + $0xa8] sm:$0xff]  ;;  %v45_v32 = vld [vmem:[%s781_s1 + $0xa0] sm:$0xff]  ;;  %vm214_vm4 = vcmask 203776   ;;  %vm298_vm5 = vcmask 72704   ;;  %s561_s22 = smov [#allocation2]  }
  0x12   :  { %435 = vmatprep.subr.mxu0 %v48_v22  ;;  %v31_v27 = vld [vmem:[%s781_s1 + $0x30] sm:$0xff]  ;;  %483 = vmatpush3.msra.mxu1 %v60_v23  ;;  %v23_v29 = vld [vmem:[%s780_s0 + $0x8] sm:$0xff]  ;;  %v29_v33 = vld [vmem:[%s781_s1 + $0x20] sm:$0xff]  ;;  %s387_s23 = sshll.u32 %s561_s22, 4  ;;  %s562_s24 = smov [#allocation4]   ;;  %s388_s23 = int_to_ptr.vmem [resolvable:$true] %s387_s23 }
  0x13   :  { %436 = vmatpush3.msra.mxu0 %v32_v24  ;;  %484 = vmatprep.subr.mxu1 %v559_v4  ;;  %v30_v30 = vld [vmem:[%s781_s1 + $0x28] sm:$0xff]  ;;  %v57_v34 = vld [vmem:[%s781_s1 + $0x100] sm:$0xff]  ;;  %v44_v35 = vld [vmem:[%s781_s1 + $0x98] sm:$0xff]  ;;  %s397_s25 = sshll.u32 %s562_s24, 4  ;;  %s515_s26 = scalar_lea.vmem %s388_s23, 128  ;;  %s398_s25 = int_to_ptr.vmem [resolvable:$true] %s397_s25 }
  0x14   :  { %437 = vmatprep.subr.mxu0 %v47_v25  ;;  %485 = vmatpush3.msra.mxu1 %v59_v26  ;;  %v58_v31 = vld [vmem:[%s781_s1 + $0x108] sm:$0xff]  ;;  %v24_v36 = vld [vmem:[%s780_s0 + $0x10] sm:$0xff]  ;;  %v28_v37 = vld [vmem:[%s781_s1 + $0x18] sm:$0xff]  ;;  %p516_p0 = scmp.ne.s32.totalorder %s388_s23, %s515_s26  ;;  %p520_p1 = scmp.lt.s32.totalorder %s388_s23, %s388_s23 }
  0x15   :  { %438 = vmatpush3.msra.mxu0 %v31_v27  ;;  %486 = vmatprep.subr.mxu1 %v559_v4  ;;  %v43_v38 = vld [vmem:[%s781_s1 + $0x90] sm:$0xff]  ;;  %v42_v40 = vld [vmem:[%s781_s1 + $0x88] sm:$0xff]  ;;  %v41_v42 = vld [vmem:[%s781_s1 + $0x80] sm:$0xff]  ;;  %p521_p2 = scmp.lt.s32.totalorder %s515_s26, %s515_s26 }
  0x16   :  { %439 = vmatprep.subr.mxu0 %v46_v28  ;;  %138 = vmatprep.mubr.f32.mxu0 %v23_v29  ;;  %v27_v39 = vld [vmem:[%s781_s1 + $0x10] sm:$0xff]  ;;  %v26_v41 = vld [vmem:[%s781_s1 + $0x8] sm:$0xff]  ;;  %v25_v43 = vld [vmem:[%s781_s1] sm:$0xff] }
  0x17   :  { %440 = vmatpush3.msra.mxu0 %v30_v30  ;;  %487 = vmatpush3.msra.mxu1 %v58_v31  ;;  %v22_v44 = vld [vmem:[%s780_s0] sm:$0xff]  ;;  %v220_v45 = vld [vmem:[%s782_s2 + $0x18] sm:$0x1]  ;;  %v219_v46 = vld [vmem:[%s782_s2 + $0x10] sm:$0xff]  ;;  %p522_p3 = por %p521_p2, %p520_p1 }
  0x18   :  { %441 = vmatprep.subr.mxu0 %v45_v32  ;;  %488 = vmatprep.subr.mxu1 %v559_v4  ;;  %v218_v47 = vld [vmem:[%s782_s2 + $0x8] sm:$0xff]  ;;  %v217_v48 = vld [vmem:[%s782_s2] sm:$0xff] }
  0x19   :  { %442 = vmatpush3.msra.mxu0 %v29_v33  ;;  %489 = vmatpush3.msra.mxu1 %v57_v34  ;;  %v302_v56 = vld [vmem:[%s783_s3 + $0x8] sm:$0x1]  ;;  %v301_v57 = vld [vmem:[%s783_s3] sm:$0xff]  ;;  %p523_p4 = pnand %p522_p3, %p516_p0 }
  0x1a   :  { %443 = vmatprep.subr.mxu0 %v44_v35  ;;  %491 = vmatmul.mubr.msk.f32.vlgmr.msra.gmra.mxu1 %vm66_vm2, %v24_v36 }
  0x1b   :  { %444 = vmatpush3.msra.mxu0 %v28_v37  ;;  %493 = vmatprep.subr.mxu1 %v559_v4 }
  0x1c   :  { %445 = vmatprep.subr.mxu0 %v43_v38  ;;  %501 = vmatprep.mubr.msk.f32.mxu1 %vm560_vm0, %v559_v4 }
  0x1d   :  { %446 = vmatpush3.msra.mxu0 %v27_v39  ;;  %494 = vmatpush3.msk.msra.mxu1 %vm224_vm3, %v220_v45 }
  0x1e   :  { %447 = vmatprep.subr.mxu0 %v42_v40  ;;  %495 = vmatprep.subr.mxu1 %v559_v4 }
  0x1f   :  { %448 = vmatpush3.msra.mxu0 %v26_v41  ;;  %496 = vmatpush3.msra.mxu1 %v219_v46 }
  0x20   :  { %449 = vmatprep.subr.mxu0 %v41_v42  ;;  %497 = vmatprep.subr.mxu1 %v559_v4 }
  0x21   :  { %450 = vmatpush3.msra.mxu0 %v25_v43  ;;  %498 = vmatpush3.msra.mxu1 %v218_v47 }
  0x22   :  { %139 = vmatmul.mubr.f32.vlgmr.msra.gmra.mxu0 %v22_v44  ;;  %499 = vmatprep.subr.mxu1 %v559_v4 }
  0x23   :  { %500 = vmatpush3.msra.mxu1 %v217_v48 }
  0x24   :  { %504 = vmatprep.subr.mxu1 %v559_v4 }
  0xda   :  { %v210_v49 = vpop.f32.mrf.mxu1 }
  0xdc   :  { %v492_v50 = vpop.f32.mrf.mxu1 }
  0xe2   :  { %v451_v51 = vpop.f32.mrf.mxu0 }
  0xe4   :  { %v452_v52 = vpop.f32.mrf.mxu0 }
  0xe5   :  { %v453_v53 = vadd.f32 %v452_v52, %v451_v51 }
  0xe7   :  { %v211_v54 = vadd.f32 %v453_v53, %v210_v49 }
  0xe9   :  { %215 = vst.msk [vmem:[#allocation2] sm:$0xff] %vm214_vm4, %v211_v54 }
  0xf0   :  { %v216_v55 = vld [vmem:[#allocation2] sm:$0xff] }
  0xf1   :  { %502 = vmatmul.mubr.msk.f32.vlgmr.msra.gmra.mxu1 %vm214_vm4, %v216_v55 }
  0xf2   :  { %508 = vmatprep.mubr.msk.f32.mxu1 %vm560_vm0, %v559_v4  ;;  %505 = vmatpush3.msk.msra.mxu1 %vm224_vm3, %v302_v56 }
  0xf3   :  { %506 = vmatprep.subr.mxu1 %v559_v4 }
  0xf4   :  { %507 = vmatpush3.msra.mxu1 %v301_v57 }
 0x1b1   :  { %v294_v58 = vpop.f32.mrf.mxu1 }
 0x1b2   :  { %299 = vst.msk [vmem:[#allocation4] sm:$0xff] %vm298_vm5, %v294_v58 }
 0x1b3   :  { %v503_v59 = vpop.f32.mrf.mxu1 }
 0x1b9   :  { %v300_v60 = vld [vmem:[#allocation4] sm:$0xff] }
 0x1ba   :  { %509 = vmatmul.mubr.msk.f32.vlgmr.msra.gmra.mxu1 %vm298_vm5, %v300_v60 }
 0x1bb   :  { %526 = shalt.err (!%p523_p4)
}
 0x1bc   :  { %390 = dma.vmem_to_hbm [thread:$0]  %s388_s23, 128, %s784_s4, [#allocation3]  }
 0x1bd   :  { %s535_s28 = scalar_lea.vmem %s398_s25, 128  ;;  %p540_p6 = scmp.lt.s32.totalorder %s398_s25, %s398_s25 }
 0x1be   :  { %p536_p5 = scmp.ne.s32.totalorder %s398_s25, %s535_s28  ;;  %p541_p7 = scmp.lt.s32.totalorder %s535_s28, %s535_s28 }
 0x1c0   :  { %p542_p8 = por %p541_p7, %p540_p6 }
 0x1c2   :  { %p543_p9 = pnand %p542_p8, %p536_p5 }
 0x1c4   :  { %546 = shalt.err (!%p543_p9)
}
 0x1c5   :  { %400 = dma.vmem_to_hbm [thread:$0]  %s398_s25, 128, %s785_s5, [#allocation5]   ;;  %vm379_vm6 = vcmask 31744  }
 0x27a   :  { %v375_v61 = vpop.f32.mrf.mxu1 }
 0x27b   :  { %380 = vst.msk [vmem:[%s786_s6] sm:$0xff] %vm379_vm6, %v375_v61 }
 0x27c   :  { %v510_v62 = vpop.f32.mrf.mxu1 }
 0x27d   :  { %555 = dma.done.wait [#allocation3], 128  }
 0x27e   :  { %556 = vsyncadd [#allocation3], 4294967168 }
 0x27f   :  { %557 = dma.done.wait [#allocation5], 128  }
 0x280   :  { %558 = vsyncadd [#allocation5], 4294967168 }
 0x281   :  { %411 = vsyncpa [#allocation3], 1 }
 0x282   :  { %412 = vsyncpa [#allocation5], 1 }

</bundles_post_ra>
